<compile_context>
chip_gen: v5e
topology: v5e:2x2
jax: 0.10.0
libtpu: 0.0.40
codegen_flags: <defaults>
</compile_context>

<pallas_src>
import jax
import jax.numpy as jnp
from jax import lax
from jax.experimental import pallas as pl
from jax.experimental.pallas import tpu as pltpu


def _round_up(v, m):
    return (v + m - 1) // m * m


def _head_kernel(x_ref, w_ref, b_ref, o_ref, acc_ref):
    # x_ref:   [TM, TK]   activation block
    # w_ref:   [E,  TK]   weight block (PyTorch [E, C] layout, no transpose)
    # b_ref:   [1,  E]    bias
    # o_ref:   [TM, E]    L2-normalized output rows
    # acc_ref: [TM, E]    f32 accumulator, resident across the K grid axis
    k = pl.program_id(1)

    @pl.when(k == 0)
    def _():
        acc_ref[...] = jnp.zeros_like(acc_ref)

    # Partial matmul: [TM, TK] x [E, TK] contracted over the last dim -> [TM, E].
    acc_ref[...] += lax.dot_general(
        x_ref[...], w_ref[...],
        dimension_numbers=(((1,), (1,)), ((), ())),
        preferred_element_type=jnp.float32)

    @pl.when(k == pl.num_programs(1) - 1)
    def _():
        y = acc_ref[...] + b_ref[...].astype(jnp.float32)
        # F.normalize(y, p=2, dim=1): y / max(||y||_2, 1e-12).
        # Clamping sq_sum at 1e-24 before rsqrt is equivalent within eps
        # semantics; rsqrt runs on the otherwise-idle EUP slot.
        sq = jnp.sum(y * y, axis=1, keepdims=True)
        inv = lax.rsqrt(jnp.maximum(sq, 1e-24))
        o_ref[...] = (y * inv).astype(o_ref.dtype)


def head_forward(x, weight, bias, *, tm=None, tk=None):
    """Head.forward: flatten(x, 1) -> Linear(c, embed_dim) -> L2-normalize.

    x:      [B, ...]   (flattened to [B, C], same as torch.flatten(x, 1))
    weight: [E, C]     (PyTorch nn.Linear layout, NOT pre-transposed)
    bias:   [E]
    """
    B = x.shape[0]
    x_flat = jnp.reshape(x, (B, -1))
    C = x_flat.shape[1]
    E = weight.shape[0]
    assert weight.shape == (E, C)

    out_dtype = x_flat.dtype

    # Tile sizes: lane-dense, (8,128)-aligned; prefer large TK (K streaming of
    # the weight) over large TM when the batch is small.
    if tm is None:
        tm = min(256, _round_up(B, 8))
    if tk is None:
        tk = min(512, _round_up(C, 128))
    e_pad = _round_up(E, 128)
    b_pad = _round_up(B, tm)
    c_pad = _round_up(C, tk)

    # Zero-pad so every block is full. Padded K columns / E rows contribute
    # zeros; padded B rows are sliced off below, so semantics are unchanged.
    # NOTE: in a real model the weight/bias padding should be done once at
    # parameter-load time, not on every call.
    xp = jnp.pad(x_flat, ((0, b_pad - B), (0, c_pad - C)))
    wp = jnp.pad(weight, ((0, e_pad - E), (0, c_pad - C)))
    bp = jnp.pad(jnp.reshape(bias, (1, E)), ((0, 0), (0, e_pad - E)))

    grid = (b_pad // tm, c_pad // tk)

    cost = pl.CostEstimate(
        flops=2 * B * C * E,
        transcendentals=B,
        bytes_accessed=(xp.size * xp.dtype.itemsize
                        + wp.size * wp.dtype.itemsize
                        + bp.size * bp.dtype.itemsize
                        + b_pad * e_pad * jnp.dtype(out_dtype).itemsize),
    )

    out = pl.pallas_call(
        _head_kernel,
        out_shape=jax.ShapeDtypeStruct((b_pad, e_pad), out_dtype),
        grid_spec=pltpu.PrefetchScalarGridSpec(
            num_scalar_prefetch=0,
            grid=grid,
            in_specs=[
                pl.BlockSpec((tm, tk), lambda i, k: (i, k)),      # activations
                pl.BlockSpec((e_pad, tk), lambda i, k: (0, k)),   # weight [E,C]
                pl.BlockSpec((1, e_pad), lambda i, k: (0, 0)),    # bias
            ],
            out_specs=pl.BlockSpec((tm, e_pad), lambda i, k: (i, 0)),
            scratch_shapes=[pltpu.VMEM((tm, e_pad), jnp.float32)],
        ),
        compiler_params=pltpu.CompilerParams(
            dimension_semantics=("parallel", "arbitrary"),
            vmem_limit_bytes=32 * 1024 * 1024,
        ),
        cost_estimate=cost,
    )(xp, wp, bp)

    return out[:B, :E]


if __name__ == "__main__":
    key = jax.random.PRNGKey(0)
    k_x, k_w, k_b = jax.random.split(key, 3)

    # Conv-feature input [B, C, H, W] flattening to c = C*H*W, projected to
    # embed_dim (module defaults embed_dim=128; here c = 4*16*16 = 1024).
    B, Cc, H, W = 2, 4, 16, 16
    c = Cc * H * W
    embed_dim = 128

    x = jax.random.normal(k_x, (B, Cc, H, W), dtype=jnp.float32)

    # Deterministic nn.Linear-style init (uniform in +-1/sqrt(c)).
    bound = 1.0 / (c ** 0.5)
    weight = jax.random.uniform(k_w, (embed_dim, c), minval=-bound, maxval=bound,
                                dtype=jnp.float32)
    bias = jax.random.uniform(k_b, (embed_dim,), minval=-bound, maxval=bound,
                              dtype=jnp.float32)

    out = head_forward(x, weight, bias)
    out = jax.block_until_ready(out)

    # Reference in plain JAX.
    x_flat = jnp.reshape(x, (B, -1))
    y_ref = x_flat @ weight.T + bias
    y_ref = y_ref / jnp.maximum(
        jnp.linalg.norm(y_ref, axis=1, keepdims=True), 1e-12)

    assert out.shape == (B, embed_dim)
    assert jnp.allclose(out, y_ref, atol=1e-4, rtol=1e-4)

    print("KERNEL_OK")
</pallas_src>

<mosaic_0001>
module attributes {stable_mosaic.version = 11 : i64} {
  func.func @_head_kernel(%arg0: i32, %arg1: i32, %arg2: memref<8x512xf32, #tpu.memory_space<vmem>>, %arg3: memref<128x512xf32, #tpu.memory_space<vmem>>, %arg4: memref<1x128xf32, #tpu.memory_space<vmem>>, %arg5: memref<8x128xf32, #tpu.memory_space<vmem>>, %arg6: memref<8x128xf32, #tpu.memory_space<vmem>>) attributes {dimension_semantics = [#tpu.dimension_semantics<parallel>, #tpu.dimension_semantics<arbitrary>], iteration_bounds = array<i64: 1, 2>, scalar_prefetch = 0 : i64, scratch_operands = 1 : i64, tpu.core_type = #tpu.core_type<tc>, window_params = [{transform_indices = @transform_0, window_bounds = array<i64: 8, 512>}, {transform_indices = @transform_1, window_bounds = array<i64: 128, 512>}, {pipeline_mode = #tpu.pipeline_mode<synchronous>, transform_indices = @transform_2, window_bounds = array<i64: 1, 128>}, {transform_indices = @transform_3, window_bounds = array<i64: 8, 128>}]} {
    %c0_i32 = arith.constant 0 : i32
    %0 = arith.cmpi eq, %arg1, %c0_i32 : i32
    %1 = arith.extui %0 : i1 to i32
    %c0_i32_0 = arith.constant 0 : i32
    %2 = arith.cmpi ne, %1, %c0_i32_0 : i32
    scf.if %2 {
      %cst_9 = arith.constant 0.000000e+00 : f32
      %12 = vector.broadcast %cst_9 : f32 to vector<8x128xf32>
      %c0_10 = arith.constant 0 : index
      %c0_11 = arith.constant 0 : index
      %13 = vector.load %arg6[%c0_10, %c0_11] : memref<8x128xf32, #tpu.memory_space<vmem>>, vector<8x128xf32>
      tpu.vector_store %arg6[%c0_10, %c0_11], %12 {strides = array<i32>} : memref<8x128xf32, #tpu.memory_space<vmem>>, vector<8x128xf32>,
    } else {
    }
    %c0 = arith.constant 0 : index
    %c0_1 = arith.constant 0 : index
    %3 = vector.load %arg6[%c0, %c0_1] : memref<8x128xf32, #tpu.memory_space<vmem>>, vector<8x128xf32>
    %c0_2 = arith.constant 0 : index
    %c0_3 = arith.constant 0 : index
    %4 = vector.load %arg2[%c0_2, %c0_3] : memref<8x512xf32, #tpu.memory_space<vmem>>, vector<8x512xf32>
    %c0_4 = arith.constant 0 : index
    %c0_5 = arith.constant 0 : index
    %5 = vector.load %arg3[%c0_4, %c0_5] : memref<128x512xf32, #tpu.memory_space<vmem>>, vector<128x512xf32>
    %cst = arith.constant dense<0.000000e+00> : vector<8x128xf32>
    %6 = tpu.matmul %4, %5, %cst {dimension_numbers = #tpu.dot_dimension_numbers<[1], [1], [0], [0], [0, 0, 1, 0], [], []>} : vector<8x512xf32>, vector<128x512xf32>, vector<8x128xf32> -> vector<8x128xf32>
    %7 = arith.addf %3, %6 : vector<8x128xf32>
    %c0_6 = arith.constant 0 : index
    %c0_7 = arith.constant 0 : index
    %8 = vector.load %arg6[%c0_6, %c0_7] : memref<8x128xf32, #tpu.memory_space<vmem>>, vector<8x128xf32>
    tpu.vector_store %arg6[%c0_6, %c0_7], %7 {strides = array<i32>} : memref<8x128xf32, #tpu.memory_space<vmem>>, vector<8x128xf32>,
    %c1_i32 = arith.constant 1 : i32
    %9 = arith.cmpi eq, %arg1, %c1_i32 : i32
    %10 = arith.extui %9 : i1 to i32
    %c0_i32_8 = arith.constant 0 : i32
    %11 = arith.cmpi ne, %10, %c0_i32_8 : i32
    scf.if %11 {
      %c0_9 = arith.constant 0 : index
      %c0_10 = arith.constant 0 : index
      %12 = vector.load %arg6[%c0_9, %c0_10] : memref<8x128xf32, #tpu.memory_space<vmem>>, vector<8x128xf32>
      %c0_11 = arith.constant 0 : index
      %c0_12 = arith.constant 0 : index
      %13 = vector.load %arg4[%c0_11, %c0_12] : memref<1x128xf32, #tpu.memory_space<vmem>>, vector<1x128xf32>
      %14 = vector.broadcast %13 : vector<1x128xf32> to vector<8x128xf32>
      %15 = arith.addf %12, %14 : vector<8x128xf32>
      %16 = arith.mulf %15, %15 : vector<8x128xf32>
      %cst_13 = arith.constant dense<0.000000e+00> : vector<8xf32>
      %17 = vector.multi_reduction <add>, %16, %cst_13 [1] : vector<8x128xf32> to vector<8xf32>
      %18 = vector.shape_cast %17 : vector<8xf32> to vector<8x1xf32>
      %cst_14 = arith.constant 1.000000e-24 : f32
      %19 = vector.broadcast %cst_14 : f32 to vector<8x1xf32>
      %20 = arith.maximumf %18, %19 : vector<8x1xf32>
      %21 = math.rsqrt %20 : vector<8x1xf32>
      %22 = vector.broadcast %21 : vector<8x1xf32> to vector<8x128xf32>
      %23 = arith.mulf %15, %22 : vector<8x128xf32>
      %c0_15 = arith.constant 0 : index
      %c0_16 = arith.constant 0 : index
      %24 = vector.load %arg5[%c0_15, %c0_16] : memref<8x128xf32, #tpu.memory_space<vmem>>, vector<8x128xf32>
      tpu.vector_store %arg5[%c0_15, %c0_16], %23 {strides = array<i32>} : memref<8x128xf32, #tpu.memory_space<vmem>>, vector<8x128xf32>,
    } else {
    }
    return
  }
  func.func @transform_0(%arg0: i32, %arg1: i32) -> (i32, i32) {
    %c0_i32 = arith.constant 0 : i32
    return %arg0, %arg1 : i32, i32
  }
  func.func @transform_1(%arg0: i32, %arg1: i32) -> (i32, i32) {
    %c0_i32 = arith.constant 0 : i32
    %c0_i32_0 = arith.constant 0 : i32
    return %c0_i32, %arg1 : i32, i32
  }
  func.func @transform_2(%arg0: i32, %arg1: i32) -> (i32, i32) {
    %c0_i32 = arith.constant 0 : i32
    %c0_i32_0 = arith.constant 0 : i32
    %c0_i32_1 = arith.constant 0 : i32
    return %c0_i32, %c0_i32_0 : i32, i32
  }
  func.func @transform_3(%arg0: i32, %arg1: i32) -> (i32, i32) {
    %c0_i32 = arith.constant 0 : i32
    %c0_i32_0 = arith.constant 0 : i32
    return %arg0, %c0_i32 : i32, i32
  }
}

</mosaic_0001>

<bundles_post_ra>
// kernel: tpu_custom_call.1
= control target key start
LH: loop header
LB: loop body
LE: loop exit
PB: predicated region body
PF: predicated region fallthrough
CT: control target
= control target key end

     0   :  { %8 = vsyncpa [#allocation4], 0  ;;  %s977_s0 = inlined_call_operand.hbm [shape: f32[8,1024], index: 0, kind: input, shape index: {}]   ;;  %s978_s1 = inlined_call_operand.hbm [shape: f32[128,1024], index: 1, kind: input, shape index: {}]   ;;  %s979_s2 = inlined_call_operand.vmem [shape: f32[1,128], index: 2, kind: input, shape index: {}]   ;;  %s980_s3 = inlined_call_operand.hbm [shape: f32[8,128], index: 3, kind: output, shape index: {}]  }
   0x1   :  { %10 = vsyncpa [#allocation4 + $0x1], 0 }
   0x2   :  { %11 = vsyncpa [#allocation7], 0 }
   0x3   :  { %13 = vsyncpa [#allocation7 + $0x1], 0 }
   0x4   :  { %14 = vsyncpa [#allocation5], 0  ;;  %s789_s12 = smov 0   ;;  %s791_s13 = smov 0  }
   0x5   :  { %s793_s14 = smov 0   ;;  %s795_s15 = smov 0  }
   0x6   :  { %s797_s16 = smov 0   ;;  %s799_s17 = smov 0  }
   0x7 LB: > { %s522_s18 = sadd.s32 4294967295, %s762_s17   ;;  %s29_s19 = sadd.s32 1, %s758_s16  ;;  %s762_s17 = sphi %s799_s17, %s20_s17   ;;  %s758_s16 = sphi %s797_s16, %s988_s16   ;;  %s754_s15 = sphi %s795_s15, %s987_s15   ;;  %s750_s14 = sphi %s793_s14, %s986_s14   ;;  %s746_s13 = sphi %s791_s13, %s985_s13   ;;  %s742_s12 = sphi %s789_s12, %s984_s12  }
   0x8   : > { %p30_p0 = scmp.ge.s32.totalorder %s29_s19, 2  ;;  %s41_s20 = sadd.s32 1, %s750_s14 }
   0x9   : > { %p48_p1 = scmp.ne.s32.totalorder %s750_s14, %s746_s13  ;;  %p49_p2 = scmp.eq.s32.totalorder %s762_s17, 0 }
   0xa   : > { %s990_s19 = smov (%p30_p0, %s29_s19), 0  ;;  %p54_p4 = scmp.ne.s32.totalorder %s746_s13, %s742_s12 }
   0xb   : > { %p825_p3 = por %p49_p2, %p48_p1  ;;  %s37_s22 = ssub.s32 %s758_s16, %s990_s19 }
   0xc   : > { %p55_p5 = scmp.eq.s32.totalorder %s522_s18, 0  ;;  %p39_p6 = scmp.eq.s32.totalorder %s37_s22, 0 }
   0xd   : > { %p557_p8 = scmp.lt.s32.totalorder %s762_s17, 2  ;;  %s843_s25 = sand.u32 1, %s750_s14  }
   0xe   : > { %p834_p7 = por %p55_p5, %p54_p4  ;;  %s540_s26 = sshll.u32 %s758_s16, 5 }
   0xf   : > { %s840_s24 = scalar_select %p39_p6, %s750_s14, %s41_s20  }
  0x10   : > { %s525_s27 = sshll.u32 %s843_s25, 5  ;;  %s165_s30 = scalar_lea.hbm %s977_s0, %s540_s26 }
  0x11   : > { %s167_s4 = sshll.u32 %s165_s30, 4  ;;  %s158_s5 = scalar_lea.vmem [#allocation3], %s525_s27  ;;  %s168_s4 = int_to_ptr.hbm [resolvable:$true] %s167_s4 }
  0x12   : > { %s169_s6 = sshll.u32 %s158_s5, 4  ;;  %p852_p9 = pnand %p557_p8, %p825_p3  ;;  %s170_s6 = int_to_ptr.vmem [resolvable:$true] %s169_s6 }
  0x13   : > { %s528_s8 = sshll.u32 %s843_s25, 9  ;;  %s185_s11 = scalar_lea.hbm %s978_s1, %s540_s26 }
  0x14   : > { %s155_s12 = scalar_lea.sflag [#allocation4], %s843_s25  ;;  %s186_s20 = sshll.u32 %s185_s11, 4  ;;  %s187_s20 = int_to_ptr.hbm [resolvable:$true] %s186_s20 }
  0x15   : > { %553 = dma.hbm_to_vmem [thread:$0]  (!%p852_p9), %s168_s4, 512, %s170_s6, %s155_s12  }
  0x16   : > { %p531_p10 = scmp.ge.s32.totalorder %s762_s17, 1  ;;  %p196_p11 = scmp.lt.s32.totalorder %s762_s17, 3 }
  0x17   : > { %s180_s22 = scalar_lea.vmem [#allocation6], %s528_s8  ;;  %s177_s27 = scalar_lea.sflag [#allocation7], %s843_s25 }
  0x18   : > { %s188_s21 = sshll.u32 %s180_s22, 4  ;;  %p197_p12 = pnand %p531_p10, %p196_p11  ;;  %s189_s21 = int_to_ptr.vmem [resolvable:$true] %s188_s21 }
  0x19   : > { %s764_s28 = smov 1024   ;;  %s765_s29 = smov 512  }
  0x1a   : > { %s766_s30 = smov 32   ;;  %200 = sbr.rel (%p197_p12) target bundleno = 403 (0x193), region = 32 }
  0x1b   : > { %556 = dma.hbm_to_vmem [thread:$0]  (!%p852_p9), %s187_s20, 8192, %s189_s21, %s177_s27, %s764_s28, %s765_s29, %s766_s30  }
  0x1c   : > { %s202_s26 = sand.u32 (!%p197_p12), 1, %s746_s13  }
  0x1d   : > { %s532_s5 = sshll.u32 (!%p197_p12), %s202_s26, 5  ;;  %s203_s4 = scalar_lea.sflag (!%p197_p12), [#allocation4], %s202_s26 }
  0x1e   : > { %s869_s6 = scalar_lea.vmem (!%p197_p12), [#allocation3], %s532_s5 }
  0x1f   : > { %729 = dma.done.wait (%p834_p7), %s203_s4, 512  }
  0x20   : > { %731 = vsyncadd (%p834_p7), %s203_s4, 4294966784  ;;  %s533_s25 = sshll.u32 %s202_s26, 9  ;;  %s213_s8 = scalar_lea.sflag [#allocation7], %s202_s26 }
  0x21   : > { %s875_s9 = scalar_lea.vmem [#allocation6], %s533_s25 }
  0x22   : > { %733 = dma.done.wait (%p834_p7), %s213_s8, 8192  }
  0x23   : > { %735 = vsyncadd (%p834_p7), %s213_s8, 4294959104  ;;  %p534_p13 = scmp.ne.s32.totalorder %s754_s15, 0 }
  0x25   : > { %245 = sbr.rel (%p534_p13) target bundleno = 44 (0x2c), region = 44 }
  0x2a   : > { %v767_v0 = vmov 0.0  }
  0x2b   : > { %246 = vst [vmem:[#allocation2] sm:$0xff] %v767_v0 }
  0x2c PF: > { %v314_v1 = vld [vmem:[%s875_s9 + $0x1f0] sm:$0xff]  ;;  %v315_v2 = vld [vmem:[%s875_s9 + $0x1f8] sm:$0xff]  ;;  %v312_v3 = vld [vmem:[%s875_s9 + $0x1e0] sm:$0xff]  ;;  %p535_p0 = scmp.ne.s32.totalorder %s754_s15, 1 }
  0x2d   : > { %356 = vmatpush.xpose.msra.mxu2 %v314_v1  ;;  %376 = vmatpush.xpose.msra.mxu3 %v315_v2  ;;  %v313_v4 = vld [vmem:[%s875_s9 + $0x1e8] sm:$0xff]  ;;  %v310_v5 = vld [vmem:[%s875_s9 + $0x1d0] sm:$0xff]  ;;  %v311_v6 = vld [vmem:[%s875_s9 + $0x1d8] sm:$0xff] }
  0x2e   : > { %316 = vmatpush.xpose.msra.mxu0 %v312_v3  ;;  %336 = vmatpush.xpose.msra.mxu1 %v313_v4  ;;  %v308_v7 = vld [vmem:[%s875_s9 + $0x1c0] sm:$0xff]  ;;  %v309_v8 = vld [vmem:[%s875_s9 + $0x1c8] sm:$0xff]  ;;  %v306_v9 = vld [vmem:[%s875_s9 + $0x1b0] sm:$0xff] }
  0x2f   : > { %v307_v10 = vld [vmem:[%s875_s9 + $0x1b8] sm:$0xff]  ;;  %v304_v11 = vld [vmem:[%s875_s9 + $0x1a0] sm:$0xff]  ;;  %v305_v12 = vld [vmem:[%s875_s9 + $0x1a8] sm:$0xff] }
  0x30   : > { %v302_v13 = vld [vmem:[%s875_s9 + $0x190] sm:$0xff]  ;;  %v303_v14 = vld [vmem:[%s875_s9 + $0x198] sm:$0xff]  ;;  %v300_v15 = vld [vmem:[%s875_s9 + $0x180] sm:$0xff] }
  0x31   : > { %357 = vmatpush.xpose.msra.mxu2 %v310_v5  ;;  %377 = vmatpush.xpose.msra.mxu3 %v311_v6  ;;  %v301_v16 = vld [vmem:[%s875_s9 + $0x188] sm:$0xff]  ;;  %v298_v17 = vld [vmem:[%s875_s9 + $0x170] sm:$0xff]  ;;  %v299_v18 = vld [vmem:[%s875_s9 + $0x178] sm:$0xff] }
  0x32   : > { %317 = vmatpush.xpose.msra.mxu0 %v308_v7  ;;  %337 = vmatpush.xpose.msra.mxu1 %v309_v8  ;;  %v296_v19 = vld [vmem:[%s875_s9 + $0x160] sm:$0xff]  ;;  %v297_v20 = vld [vmem:[%s875_s9 + $0x168] sm:$0xff]  ;;  %v294_v21 = vld [vmem:[%s875_s9 + $0x150] sm:$0xff] }
  0x33   : > { %v295_v22 = vld [vmem:[%s875_s9 + $0x158] sm:$0xff]  ;;  %v292_v23 = vld [vmem:[%s875_s9 + $0x140] sm:$0xff]  ;;  %v293_v24 = vld [vmem:[%s875_s9 + $0x148] sm:$0xff] }
  0x34   : > { %v290_v25 = vld [vmem:[%s875_s9 + $0x130] sm:$0xff]  ;;  %v291_v26 = vld [vmem:[%s875_s9 + $0x138] sm:$0xff]  ;;  %v288_v27 = vld [vmem:[%s875_s9 + $0x120] sm:$0xff] }
  0x35   : > { %358 = vmatpush.xpose.msra.mxu2 %v306_v9  ;;  %378 = vmatpush.xpose.msra.mxu3 %v307_v10  ;;  %v289_v28 = vld [vmem:[%s875_s9 + $0x128] sm:$0xff]  ;;  %v286_v29 = vld [vmem:[%s875_s9 + $0x110] sm:$0xff]  ;;  %v287_v30 = vld [vmem:[%s875_s9 + $0x118] sm:$0xff] }
  0x36   : > { %318 = vmatpush.xpose.msra.mxu0 %v304_v11  ;;  %338 = vmatpush.xpose.msra.mxu1 %v305_v12  ;;  %v284_v31 = vld [vmem:[%s875_s9 + $0x100] sm:$0xff]  ;;  %v285_v32 = vld [vmem:[%s875_s9 + $0x108] sm:$0xff]  ;;  %v282_v33 = vld [vmem:[%s875_s9 + $0xf0] sm:$0xff] }
  0x37   : > { %v283_v34 = vld [vmem:[%s875_s9 + $0xf8] sm:$0xff]  ;;  %v280_v35 = vld [vmem:[%s875_s9 + $0xe0] sm:$0xff]  ;;  %v281_v36 = vld [vmem:[%s875_s9 + $0xe8] sm:$0xff] }
  0x38   : > { %v278_v37 = vld [vmem:[%s875_s9 + $0xd0] sm:$0xff]  ;;  %v279_v38 = vld [vmem:[%s875_s9 + $0xd8] sm:$0xff]  ;;  %v276_v39 = vld [vmem:[%s875_s9 + $0xc0] sm:$0xff] }
  0x39   : > { %359 = vmatpush.xpose.msra.mxu2 %v302_v13  ;;  %379 = vmatpush.xpose.msra.mxu3 %v303_v14  ;;  %v277_v40 = vld [vmem:[%s875_s9 + $0xc8] sm:$0xff]  ;;  %v274_v41 = vld [vmem:[%s875_s9 + $0xb0] sm:$0xff]  ;;  %v275_v42 = vld [vmem:[%s875_s9 + $0xb8] sm:$0xff] }
  0x3a   : > { %319 = vmatpush.xpose.msra.mxu0 %v300_v15  ;;  %339 = vmatpush.xpose.msra.mxu1 %v301_v16  ;;  %v272_v43 = vld [vmem:[%s875_s9 + $0xa0] sm:$0xff]  ;;  %v273_v44 = vld [vmem:[%s875_s9 + $0xa8] sm:$0xff]  ;;  %v270_v45 = vld [vmem:[%s875_s9 + $0x90] sm:$0xff] }
  0x3b   : > { %v271_v46 = vld [vmem:[%s875_s9 + $0x98] sm:$0xff]  ;;  %v268_v47 = vld [vmem:[%s875_s9 + $0x80] sm:$0xff]  ;;  %v269_v48 = vld [vmem:[%s875_s9 + $0x88] sm:$0xff] }
  0x3c   : > { %v266_v49 = vld [vmem:[%s875_s9 + $0x70] sm:$0xff]  ;;  %v267_v50 = vld [vmem:[%s875_s9 + $0x78] sm:$0xff]  ;;  %v264_v51 = vld [vmem:[%s875_s9 + $0x60] sm:$0xff] }
  0x3d   : > { %360 = vmatpush.xpose.msra.mxu2 %v298_v17  ;;  %380 = vmatpush.xpose.msra.mxu3 %v299_v18  ;;  %v265_v52 = vld [vmem:[%s875_s9 + $0x68] sm:$0xff]  ;;  %v262_v53 = vld [vmem:[%s875_s9 + $0x50] sm:$0xff]  ;;  %v263_v54 = vld [vmem:[%s875_s9 + $0x58] sm:$0xff] }
  0x3e   : > { %320 = vmatpush.xpose.msra.mxu0 %v296_v19  ;;  %340 = vmatpush.xpose.msra.mxu1 %v297_v20  ;;  %v260_v55 = vld [vmem:[%s875_s9 + $0x40] sm:$0xff]  ;;  %v261_v56 = vld [vmem:[%s875_s9 + $0x48] sm:$0xff]  ;;  %v258_v57 = vld [vmem:[%s875_s9 + $0x30] sm:$0xff] }
  0x3f   : > { %v259_v58 = vld [vmem:[%s875_s9 + $0x38] sm:$0xff]  ;;  %v256_v59 = vld [vmem:[%s875_s9 + $0x20] sm:$0xff]  ;;  %v257_v60 = vld [vmem:[%s875_s9 + $0x28] sm:$0xff] }
  0x40   : > { %v254_v61 = vld [vmem:[%s875_s9 + $0x10] sm:$0xff]  ;;  %v255_v62 = vld [vmem:[%s875_s9 + $0x18] sm:$0xff]  ;;  %v252_v63 = vld [vmem:[%s875_s9] sm:$0xff] }
  0x41   : > { %361 = vmatpush.xpose.msra.mxu2 %v294_v21  ;;  %381 = vmatpush.xpose.msra.mxu3 %v295_v22  ;;  %v253_v0 = vld [vmem:[%s875_s9 + $0x8] sm:$0xff]  ;;  %v250_v1 = vld [vmem:[%s869_s6 + $0x10] sm:$0xff]  ;;  %v251_v2 = vld [vmem:[%s869_s6 + $0x18] sm:$0xff] }
  0x42   : > { %321 = vmatpush.xpose.msra.mxu0 %v292_v23  ;;  %341 = vmatpush.xpose.msra.mxu1 %v293_v24  ;;  %v248_v3 = vld [vmem:[%s869_s6] sm:$0xff]  ;;  %v249_v4 = vld [vmem:[%s869_s6 + $0x8] sm:$0xff]  ;;  %v247_v11 = vld [vmem:[#allocation2] sm:$0xff] }
  0x45   : > { %362 = vmatpush.xpose.msra.mxu2 %v290_v25  ;;  %382 = vmatpush.xpose.msra.mxu3 %v291_v26 }
  0x46   : > { %322 = vmatpush.xpose.msra.mxu0 %v288_v27  ;;  %342 = vmatpush.xpose.msra.mxu1 %v289_v28 }
  0x49   : > { %363 = vmatpush.xpose.msra.mxu2 %v286_v29  ;;  %383 = vmatpush.xpose.msra.mxu3 %v287_v30 }
  0x4a   : > { %323 = vmatpush.xpose.msra.mxu0 %v284_v31  ;;  %343 = vmatpush.xpose.msra.mxu1 %v285_v32 }
  0x4d   : > { %364 = vmatpush.xpose.msra.mxu2 %v282_v33  ;;  %384 = vmatpush.xpose.msra.mxu3 %v283_v34 }
  0x4e   : > { %324 = vmatpush.xpose.msra.mxu0 %v280_v35  ;;  %344 = vmatpush.xpose.msra.mxu1 %v281_v36 }
  0x51   : > { %365 = vmatpush.xpose.msra.mxu2 %v278_v37  ;;  %385 = vmatpush.xpose.msra.mxu3 %v279_v38 }
  0x52   : > { %325 = vmatpush.xpose.msra.mxu0 %v276_v39  ;;  %345 = vmatpush.xpose.msra.mxu1 %v277_v40 }
  0x55   : > { %366 = vmatpush.xpose.msra.mxu2 %v274_v41  ;;  %386 = vmatpush.xpose.msra.mxu3 %v275_v42 }
  0x56   : > { %326 = vmatpush.xpose.msra.mxu0 %v272_v43  ;;  %346 = vmatpush.xpose.msra.mxu1 %v273_v44 }
  0x59   : > { %367 = vmatpush.xpose.msra.mxu2 %v270_v45  ;;  %387 = vmatpush.xpose.msra.mxu3 %v271_v46 }
  0x5a   : > { %327 = vmatpush.xpose.msra.mxu0 %v268_v47  ;;  %347 = vmatpush.xpose.msra.mxu1 %v269_v48 }
  0x5d   : > { %368 = vmatpush.xpose.msra.mxu2 %v266_v49  ;;  %388 = vmatpush.xpose.msra.mxu3 %v267_v50 }
  0x5e   : > { %328 = vmatpush.xpose.msra.mxu0 %v264_v51  ;;  %348 = vmatpush.xpose.msra.mxu1 %v265_v52 }
  0x61   : > { %369 = vmatpush.xpose.msra.mxu2 %v262_v53  ;;  %389 = vmatpush.xpose.msra.mxu3 %v263_v54 }
  0x62   : > { %329 = vmatpush.xpose.msra.mxu0 %v260_v55  ;;  %349 = vmatpush.xpose.msra.mxu1 %v261_v56 }
  0x65   : > { %370 = vmatpush.xpose.msra.mxu2 %v258_v57  ;;  %390 = vmatpush.xpose.msra.mxu3 %v259_v58 }
  0x66   : > { %330 = vmatpush.xpose.msra.mxu0 %v256_v59  ;;  %350 = vmatpush.xpose.msra.mxu1 %v257_v60 }
  0x69   : > { %371 = vmatpush.xpose.msra.mxu2 %v254_v61  ;;  %391 = vmatpush.xpose.msra.mxu3 %v255_v62 }
  0x6a   : > { %331 = vmatpush.xpose.msra.mxu0 %v252_v63  ;;  %351 = vmatpush.xpose.msra.mxu1 %v253_v0 }
  0x6c   : > { %372 = vmatmul.f32.vlgmr.msra.gmra.mxu2 %v250_v1  ;;  %392 = vmatmul.f32.vlgmr.msra.gmra.mxu3 %v251_v2 }
  0x6d   : > { %332 = vmatmul.f32.vlgmr.msra.gmra.mxu0 %v248_v3  ;;  %352 = vmatmul.f32.vlgmr.msra.gmra.mxu1 %v249_v4 }
  0xea   : > { %v333_v5 = vpop.f32.mrf.mxu0  ;;  %v353_v6 = vpop.f32.mrf.mxu1 }
  0xeb   : > { %v354_v7 = vadd.f32 %v353_v6, %v333_v5 }
  0xef   : > { %v373_v8 = vpop.f32.mrf.mxu2  ;;  %v393_v9 = vpop.f32.mrf.mxu3 }
  0xf0   : > { %v374_v10 = vadd.f32 %v373_v8, %v354_v7 }
  0xf2   : > { %v394_v12 = vadd.f32 %v393_v9, %v374_v10  ;;  %401 = sbr.rel (%p535_p0) target bundleno = 397 (0x18d), region = 48 }
  0xf4   : > { %v396_v13 = vadd.f32 %v394_v12, %v247_v11 }
  0xf6   : > { %397 = vst [vmem:[#allocation2] sm:$0xff] %v396_v13 }
  0xf7   : > { %v613_v15 = vld [vmem:[%s979_s2] ss:$0 sm:$0xff] }
  0xfd   : > { %v402_v14 = vld [vmem:[#allocation2] sm:$0xff] }
  0xfe   : > { %v407_v16 = vadd.f32 %v613_v15, %v402_v14 }
 0x100   : > { %v408_v17 = vmul.f32 %v407_v16, %v407_v16 }
 0x102   : > { %409 = vadd.xlane.f32.xlu0 %v408_v17 }
 0x175   : > { %v410_v18 = vpop.xlane.xlu0 %409 }
 0x176   : > { %v411_v19 = vmax.f32 %v410_v18, 1e-24 }
 0x178   : > { %614 = vrsqrt.f32 %v411_v19  ;;  %vm418_vm1 = vweird.f32 %v411_v19 }
 0x17e   : > { %v615_v20 = vpop.eup %614 }
 0x17f   : > { %v413_v21 = vmul.f32 %v615_v20, %v411_v19  ;;  %vm419_vm0 = vweird.f32 %v615_v20 }
 0x180   : > { %vm420_vm2 = vmor %vm418_vm1, %vm419_vm0 }
 0x181   : > { %v414_v22 = vmul.f32 %v615_v20, %v413_v21 }
 0x183   : > { %v415_v23 = vmul.f32 0.5, %v414_v22 }
 0x185   : > { %v416_v24 = vsub.f32 1.5, %v415_v23 }
 0x187   : > { %v417_v25 = vmul.f32 %v615_v20, %v416_v24 }
 0x189   : > { %v421_v26 = vsel %vm420_vm2, %v615_v20, %v417_v25 }
 0x18a   : > { %v422_v27 = vmul.f32 %v421_v26, %v407_v16 }
 0x18c   : > { %423 = vst [vmem:[#allocation8] sm:$0xff] %v422_v27 }
 0x18d PF: > { %p558_p1 = scmp.eq.s32.totalorder %s522_s18, 1  ;;  %s434_s11 = sshll.u32 %s980_s3, 4  ;;  %s435_s11 = int_to_ptr.hbm [resolvable:$true] %s434_s11 }
 0x18e   : > { %s768_s12 = smov [#allocation8]  }
 0x18f   : > { %s432_s20 = sshll.u32 %s768_s12, 4  ;;  %s433_s20 = int_to_ptr.vmem [resolvable:$true] %s432_s20 }
 0x190   : > { %547 = dma.vmem_to_hbm [thread:$0]  (%p558_p1), %s433_s20, 128, %s435_s11, [#allocation5]  }
 0x191   : > { %737 = dma.done.wait (%p558_p1), [#allocation5], 128  }
 0x192   : > { %739 = vsyncadd (%p558_p1), [#allocation5], 4294967168 }
 0x193 PF: > { %s20_s17 = sadd.s32 1, %s762_s17   ;;  %s984_s12 = smov %s746_s13 }
 0x194   : > { %p17_p2 = scmp.ge.s32.totalorder %s20_s17, 4   ;;  %s985_s13 = smov %s750_s14 }
 0x195   : > { %s986_s14 = smov %s840_s24  ;;  %s987_s15 = smov %s758_s16 }
 0x196   : > { %s988_s16 = smov %s990_s19  ;;  %19 = sbr.rel (!%p17_p2) target bundleno = 7 (0x7), region = 91 }
 0x19b   :  { %448 = vsyncpa [#allocation4], 1 }
 0x19c   :  { %450 = vsyncpa [#allocation4 + $0x1], 1 }
 0x19d   :  { %451 = vsyncpa [#allocation7], 1 }
 0x19e   :  { %453 = vsyncpa [#allocation7 + $0x1], 1 }
 0x19f   :  { %454 = vsyncpa [#allocation5], 1 }
 0x1a0   :  { %456 = vsyncpa [#allocation5 + $0x1], 1 }

</bundles_post_ra>
